<compile_context>
chip_gen: v6e
topology: v6e:2x2x1
jax: 0.10.0
libtpu: 0.0.40
codegen_flags: <defaults>
</compile_context>

<pallas_src>
import functools

import jax
import jax.numpy as jnp
from jax import lax
from jax.experimental import pallas as pl
from jax.experimental.pallas import tpu as pltpu


def _focal_loss_kernel(*refs, smooth, gamma, hw_valid, num_j_inner,
                       use_alpha, mask_tail):
    if use_alpha:
        logit_ref, tgt_ref, alpha_ref, out_ref, acc_ref = refs
    else:
        logit_ref, tgt_ref, out_ref, acc_ref = refs
        alpha_ref = None

    s = pl.program_id(1)
    j = pl.program_id(2)

    @pl.when(j == 0)
    def _():
        acc_ref[...] = jnp.zeros_like(acc_ref)

    logit = logit_ref[0].astype(jnp.float32)            # (C, TN) f32 in vregs
    tgt = tgt_ref[0].astype(jnp.int32)                  # (1, TN) int32
    c, tn = logit.shape

    # one-hot via iota compare (scatter_ equivalent); torch.clamp of 0/1
    # values with [smooth/(C-1), 1-smooth] is an affine remap.
    class_ids = lax.broadcasted_iota(jnp.int32, (c, tn), 0)
    onehot_exact = (class_ids == tgt).astype(jnp.float32)          # (C, TN)
    lo = (smooth / (c - 1)) if c > 1 else 0.0
    hi = 1.0 - smooth
    onehot = onehot_exact * (hi - lo) + lo

    pt = jnp.sum(onehot * logit, axis=0, keepdims=True) + smooth   # (1, TN)
    logpt = jnp.log(pt)

    one_minus_pt = 1.0 - pt
    if isinstance(gamma, int):
        focal = lax.integer_pow(one_minus_pt, gamma)    # VPU, sign-safe
    else:
        # clamp: label smoothing can push pt slightly above 1
        focal = jnp.maximum(one_minus_pt, 0.0) ** gamma

    if use_alpha:
        # alpha[target] gather as a masked class-axis sum against (C, 1).
        alpha_pos = jnp.sum(onehot_exact * alpha_ref[...], axis=0,
                            keepdims=True)
        loss = (-1.0) * alpha_pos * focal * logpt                   # (1, TN)
    else:
        loss = (-1.0) * focal * logpt                               # (1, TN)

    if mask_tail:
        # mask lanes beyond the valid spatial extent (ragged / padded tail).
        # Keep as a select AFTER logpt so NaN/inf in garbage lanes is dropped.
        gj = s * num_j_inner + j
        lane = gj * tn + lax.broadcasted_iota(jnp.int32, (1, tn), 1)
        loss = jnp.where(lane < hw_valid, loss, 0.0)

    # pure VPU elementwise accumulation; cross-lane reduce only at finalize.
    acc_ref[...] = acc_ref[...] + loss

    @pl.when(j == pl.num_programs(2) - 1)
    def _():
        total = jnp.sum(acc_ref[...])
        out_ref[...] = jnp.broadcast_to(total, out_ref.shape).astype(
            jnp.float32)


def focal_loss(logit_nchw, target, *, alpha=None, gamma=2, balance_index=0,
               smooth=1e-5, size_average=True, tn_cap=262144,
               vmem_tile_budget_bytes=48 * 1024 * 1024):
    """Pallas TPU FocalLoss forward (apply_nonlin=None semantics)."""
    if smooth is not None and (smooth < 0 or smooth > 1.0):
        raise ValueError('smooth value should be in [0,1]')
    smooth_f = float(smooth) if smooth is not None else 0.0

    n, c, h, w = logit_nchw.shape
    hw = h * w
    m = n * hw

    # NCHW is already class-major over spatial: free reshape, no transpose.
    logit = logit_nchw.reshape(n, c, hw)
    if jnp.issubdtype(target.dtype, jnp.integer):
        tgt = target.reshape(n, 1, hw)                  # keep narrow int dtype
    else:
        tgt = target.reshape(n, 1, hw).astype(jnp.int32)

    # alpha handling (matches __init__/forward logic of the PyTorch module)
    use_alpha = alpha is not None
    alpha_col = None
    if use_alpha:
        if isinstance(alpha, (list, tuple)) or hasattr(alpha, 'shape'):
            a = jnp.asarray(alpha, jnp.float32)
            assert a.shape[0] == c
            alpha_vec = a / a.sum()
        elif isinstance(alpha, float):
            alpha_vec = jnp.full((c,), 1.0 - alpha, jnp.float32)
            alpha_vec = alpha_vec.at[balance_index].set(alpha)
        else:
            raise TypeError('Not support alpha type')
        alpha_col = alpha_vec.reshape(c, 1)

    logit_bytes = jnp.dtype(logit.dtype).itemsize
    tgt_bytes = jnp.dtype(tgt.dtype).itemsize

    def tile_bytes(tn_, buffers):
        logit_blk = c * tn_ * logit_bytes * buffers          # pipelined logits
        tgt_blk = 8 * tn_ * tgt_bytes * buffers              # (1,tn) -> 8 sublanes
        acc = 8 * tn_ * 4                                    # f32 scratch, padded
        temps = 4 * c * tn_ * 4                              # (C,TN) f32 temporaries
        return logit_blk + tgt_blk + acc + temps + 64 * 1024

    # choose hw_work (possibly padded to a multiple of 128) and lane tile tn
    if hw % 128 != 0 and tile_bytes(hw, 2) <= vmem_tile_budget_bytes:
        hw_work = hw
        tn = hw                                  # full-extent last-dim block
    else:
        hw_work = ((hw + 127) // 128) * 128
        if hw_work != hw:
            # TODO(synk): padding costs one extra HBM pass; only hit when an
            # odd H*W is too large to take as a single full-extent block.
            pad = hw_work - hw
            logit = jnp.pad(logit, ((0, 0), (0, 0), (0, pad)))
            tgt = jnp.pad(tgt, ((0, 0), (0, 0), (0, pad)))
        tn = min(tn_cap, hw_work)
        tn = max(128, (tn // 128) * 128)
        while tn > 128 and tile_bytes(tn, 2) > vmem_tile_budget_bytes:
            tn -= 128
    num_j = pl.cdiv(hw_work, tn)

    # deeper pipelining only when large C forces small tiles and VMEM allows
    buffers = 3 if (tn <= 4096 and num_j >= 4 and
                    tile_bytes(tn, 3) <= vmem_tile_budget_bytes) else 2

    # second parallel axis over spatial for small N (both v7x TensorCores)
    splits = 2 if (n <= 2 and num_j >= 2 and num_j % 2 == 0) else 1
    num_j_inner = num_j // splits

    mask_tail = (num_j * tn != hw)

    kernel = functools.partial(
        _focal_loss_kernel, smooth=smooth_f, gamma=gamma, hw_valid=hw,
        num_j_inner=num_j_inner, use_alpha=use_alpha, mask_tail=mask_tail)

    def data_map(b, s, j):
        return (b, 0, s * num_j_inner + j)

    if buffers != 2:
        logit_spec = pl.BlockSpec((1, c, tn), data_map,
                                  pipeline_mode=pl.Buffered(buffers))
        tgt_spec = pl.BlockSpec((1, 1, tn), data_map,
                                pipeline_mode=pl.Buffered(buffers))
    else:
        logit_spec = pl.BlockSpec((1, c, tn), data_map)
        tgt_spec = pl.BlockSpec((1, 1, tn), data_map)

    in_specs = [logit_spec, tgt_spec]
    args = [logit, tgt]
    if use_alpha:
        in_specs.append(pl.BlockSpec((c, 1), lambda b, s, j: (0, 0)))
        args.append(alpha_col)

    footprint = tile_bytes(tn, buffers)
    vmem_limit = int(min(64 * 1024 * 1024,
                         max(32 * 1024 * 1024, footprint + 8 * 1024 * 1024)))

    partials = pl.pallas_call(
        kernel,
        out_shape=jax.ShapeDtypeStruct((n, splits, 128), jnp.float32),
        grid_spec=pltpu.PrefetchScalarGridSpec(
            num_scalar_prefetch=0,
            grid=(n, splits, num_j_inner),
            in_specs=in_specs,
            out_specs=pl.BlockSpec((1, 1, 128), lambda b, s, j: (b, s, 0)),
            scratch_shapes=[pltpu.VMEM((1, tn), jnp.float32)],
        ),
        compiler_params=pltpu.CompilerParams(
            dimension_semantics=("parallel", "parallel", "arbitrary"),
            vmem_limit_bytes=vmem_limit),
    )(*args)

    total = jnp.sum(partials[:, :, 0])
    if size_average:
        return total / float(m)
    return total


def _focal_loss_ref(logit_nchw, target, *, alpha_vec=None, gamma=2,
                    smooth=1e-5, size_average=True):
    """Pure-JAX reference of the PyTorch forward."""
    n, c, h, w = logit_nchw.shape
    logit = jnp.transpose(logit_nchw, (0, 2, 3, 1)).reshape(-1, c)
    tgt = target.reshape(-1)
    onehot = jax.nn.one_hot(tgt, c, dtype=jnp.float32)
    if smooth:
        onehot = jnp.clip(onehot, smooth / (c - 1), 1.0 - smooth)
    pt = jnp.sum(onehot * logit.astype(jnp.float32), axis=1) + smooth
    logpt = jnp.log(pt)
    if alpha_vec is None:
        alpha_vec = jnp.ones((c,), jnp.float32)
    alpha_t = alpha_vec[tgt]
    loss = -alpha_t * (1.0 - pt) ** gamma * logpt
    return loss.mean() if size_average else loss.sum()


if __name__ == "__main__":
    key = jax.random.PRNGKey(0)
    k1, k2 = jax.random.split(key)
    N, C, H, W = 2, 4, 16, 16

    # apply_nonlin=None in the module, so the loss expects probability-like
    # inputs (pt must be > 0 for log). Build them with a softmax outside the
    # kernel, exactly as a caller of the PyTorch module would.
    raw = jax.random.normal(k1, (N, C, H, W), dtype=jnp.float32)
    logit = jax.nn.softmax(raw, axis=1)
    target = jax.random.randint(k2, (N, 1, H, W), 0, C, dtype=jnp.int32)

    # alpha=None fast path
    loss = focal_loss(logit, target, gamma=2, smooth=1e-5, size_average=True)
    loss = jax.block_until_ready(loss)
    ref = jax.block_until_ready(
        _focal_loss_ref(logit, target, gamma=2, smooth=1e-5,
                        size_average=True))
    assert jnp.allclose(loss, ref, rtol=1e-4, atol=1e-6), (loss, ref)

    # list alpha path (exercises the in-kernel alpha gather)
    alpha_list = [0.1, 0.2, 0.3, 0.4]
    loss_a = focal_loss(logit, target, alpha=alpha_list, gamma=2, smooth=1e-5,
                        size_average=True)
    loss_a = jax.block_until_ready(loss_a)
    a = jnp.asarray(alpha_list, jnp.float32)
    ref_a = jax.block_until_ready(
        _focal_loss_ref(logit, target, alpha_vec=a / a.sum(), gamma=2,
                        smooth=1e-5, size_average=True))
    assert jnp.allclose(loss_a, ref_a, rtol=1e-4, atol=1e-6), (loss_a, ref_a)

    print("KERNEL_OK")
</pallas_src>

<mosaic_0001>
module attributes {stable_mosaic.version = 11 : i64} {
  func.func @_focal_loss_kernel(%arg0: i32, %arg1: i32, %arg2: i32, %arg3: memref<1x4x256xf32, #tpu.memory_space<vmem>>, %arg4: memref<1x1x256xi32, #tpu.memory_space<vmem>>, %arg5: memref<1x1x128xf32, #tpu.memory_space<vmem>>, %arg6: memref<1x256xf32, #tpu.memory_space<vmem>>) attributes {dimension_semantics = [#tpu.dimension_semantics<parallel>, #tpu.dimension_semantics<parallel>, #tpu.dimension_semantics<arbitrary>], iteration_bounds = array<i64: 2, 1, 1>, scalar_prefetch = 0 : i64, scratch_operands = 1 : i64, tpu.core_type = #tpu.core_type<tc>, window_params = [{transform_indices = @transform_0, window_bounds = array<i64: 1, 4, 256>}, {transform_indices = @transform_1, window_bounds = array<i64: 1, 1, 256>}, {transform_indices = @transform_2, window_bounds = array<i64: 1, 1, 128>}]} {
    %c0_i32 = arith.constant 0 : i32
    %0 = arith.cmpi eq, %arg2, %c0_i32 : i32
    %1 = arith.extui %0 : i1 to i32
    %c0_i32_0 = arith.constant 0 : i32
    %2 = arith.cmpi ne, %1, %c0_i32_0 : i32
    scf.if %2 {
      %cst_17 = arith.constant 0.000000e+00 : f32
      %34 = vector.broadcast %cst_17 : f32 to vector<1x256xf32>
      %c0_18 = arith.constant 0 : index
      %c0_19 = arith.constant 0 : index
      %35 = vector.load %arg6[%c0_18, %c0_19] : memref<1x256xf32, #tpu.memory_space<vmem>>, vector<1x256xf32>
      tpu.vector_store %arg6[%c0_18, %c0_19], %34 {strides = array<i32>} : memref<1x256xf32, #tpu.memory_space<vmem>>, vector<1x256xf32>,
    } else {
    }
    %c0 = arith.constant 0 : index
    %c0_1 = arith.constant 0 : index
    %c0_2 = arith.constant 0 : index
    %3 = vector.load %arg3[%c0, %c0_1, %c0_2] : memref<1x4x256xf32, #tpu.memory_space<vmem>>, vector<1x4x256xf32>
    %4 = vector.shape_cast %3 : vector<1x4x256xf32> to vector<4x256xf32>
    %c0_3 = arith.constant 0 : index
    %c0_4 = arith.constant 0 : index
    %c0_5 = arith.constant 0 : index
    %5 = vector.load %arg4[%c0_3, %c0_4, %c0_5] : memref<1x1x256xi32, #tpu.memory_space<vmem>>, vector<1x1x256xi32>
    %6 = vector.shape_cast %5 : vector<1x1x256xi32> to vector<1x256xi32>
    %7 = tpu.iota {dimensions = array<i32: 0>} : vector<4x256xi32>
    %8 = vector.broadcast %6 : vector<1x256xi32> to vector<4x256xi32>
    %9 = arith.cmpi eq, %7, %8 : vector<4x256xi32>
    %10 = arith.extui %9 : vector<4x256xi1> to vector<4x256xi32>
    %11 = arith.sitofp %10 : vector<4x256xi32> to vector<4x256xf32>
    %cst = arith.constant 0.999986648 : f32
    %12 = vector.broadcast %cst : f32 to vector<4x256xf32>
    %13 = arith.mulf %11, %12 : vector<4x256xf32>
    %cst_6 = arith.constant 3.33333332E-6 : f32
    %14 = vector.broadcast %cst_6 : f32 to vector<4x256xf32>
    %15 = arith.addf %13, %14 : vector<4x256xf32>
    %16 = arith.mulf %15, %4 : vector<4x256xf32>
    %cst_7 = arith.constant dense<0.000000e+00> : vector<256xf32>
    %17 = vector.multi_reduction <add>, %16, %cst_7 [0] : vector<4x256xf32> to vector<256xf32>
    %18 = vector.shape_cast %17 : vector<256xf32> to vector<1x256xf32>
    %cst_8 = arith.constant 9.99999974E-6 : f32
    %19 = vector.broadcast %cst_8 : f32 to vector<1x256xf32>
    %20 = arith.addf %18, %19 : vector<1x256xf32>
    %21 = math.log %20 : vector<1x256xf32>
    %cst_9 = arith.constant 1.000000e+00 : f32
    %22 = vector.broadcast %cst_9 : f32 to vector<1x256xf32>
    %23 = arith.subf %22, %20 : vector<1x256xf32>
    %24 = arith.mulf %23, %23 : vector<1x256xf32>
    %cst_10 = arith.constant -1.000000e+00 : f32
    %25 = vector.broadcast %cst_10 : f32 to vector<1x256xf32>
    %26 = arith.mulf %25, %24 : vector<1x256xf32>
    %27 = arith.mulf %26, %21 : vector<1x256xf32>
    %c0_11 = arith.constant 0 : index
    %c0_12 = arith.constant 0 : index
    %28 = vector.load %arg6[%c0_11, %c0_12] : memref<1x256xf32, #tpu.memory_space<vmem>>, vector<1x256xf32>
    %29 = arith.addf %28, %27 : vector<1x256xf32>
    %c0_13 = arith.constant 0 : index
    %c0_14 = arith.constant 0 : index
    %30 = vector.load %arg6[%c0_13, %c0_14] : memref<1x256xf32, #tpu.memory_space<vmem>>, vector<1x256xf32>
    tpu.vector_store %arg6[%c0_13, %c0_14], %29 {strides = array<i32>} : memref<1x256xf32, #tpu.memory_space<vmem>>, vector<1x256xf32>,
    %c0_i32_15 = arith.constant 0 : i32
    %31 = arith.cmpi eq, %arg2, %c0_i32_15 : i32
    %32 = arith.extui %31 : i1 to i32
    %c0_i32_16 = arith.constant 0 : i32
    %33 = arith.cmpi ne, %32, %c0_i32_16 : i32
    scf.if %33 {
      %c0_17 = arith.constant 0 : index
      %c0_18 = arith.constant 0 : index
      %34 = vector.load %arg6[%c0_17, %c0_18] : memref<1x256xf32, #tpu.memory_space<vmem>>, vector<1x256xf32>
      %35 = vector.shape_cast %34 : vector<1x256xf32> to vector<1x1x256xf32>
      %cst_19 = arith.constant dense<0.000000e+00> : vector<1xf32>
      %36 = vector.multi_reduction <add>, %35, %cst_19 [1, 2] : vector<1x1x256xf32> to vector<1xf32>
      %37 = vector.shape_cast %36 : vector<1xf32> to vector<1x1x1xf32>
      %38 = vector.extract %37[0, 0, 0] : f32 from vector<1x1x1xf32>
      %39 = vector.broadcast %38 : f32 to vector<1x1x128xf32>
      %c0_20 = arith.constant 0 : index
      %c0_21 = arith.constant 0 : index
      %c0_22 = arith.constant 0 : index
      %40 = vector.load %arg5[%c0_20, %c0_21, %c0_22] : memref<1x1x128xf32, #tpu.memory_space<vmem>>, vector<1x1x128xf32>
      tpu.vector_store %arg5[%c0_20, %c0_21, %c0_22], %39 {strides = array<i32>} : memref<1x1x128xf32, #tpu.memory_space<vmem>>, vector<1x1x128xf32>,
    } else {
    }
    return
  }
  func.func @transform_0(%arg0: i32, %arg1: i32, %arg2: i32) -> (i32, i32, i32) {
    %c1_i32 = arith.constant 1 : i32
    %0 = arith.muli %arg1, %c1_i32 : i32
    %1 = arith.addi %0, %arg2 : i32
    %c0_i32 = arith.constant 0 : i32
    %c0_i32_0 = arith.constant 0 : i32
    return %arg0, %c0_i32, %1 : i32, i32, i32
  }
  func.func @transform_1(%arg0: i32, %arg1: i32, %arg2: i32) -> (i32, i32, i32) {
    %c1_i32 = arith.constant 1 : i32
    %0 = arith.muli %arg1, %c1_i32 : i32
    %1 = arith.addi %0, %arg2 : i32
    %c0_i32 = arith.constant 0 : i32
    %c0_i32_0 = arith.constant 0 : i32
    return %arg0, %c0_i32, %1 : i32, i32, i32
  }
  func.func @transform_2(%arg0: i32, %arg1: i32, %arg2: i32) -> (i32, i32, i32) {
    %c0_i32 = arith.constant 0 : i32
    %c0_i32_0 = arith.constant 0 : i32
    return %arg0, %arg1, %c0_i32 : i32, i32, i32
  }
}

</mosaic_0001>

<bundles_post_ra>
// kernel: tpu_custom_call.1
= control target key start
LH: loop header
LB: loop body
LE: loop exit
PB: predicated region body
PF: predicated region fallthrough
CT: control target
= control target key end

     0   :  { %7 = vsyncpa [#allocation4], 0  ;;  %s923_s0 = inlined_call_operand.hbm [shape: f32[2,4,256], index: 0, kind: input, shape index: {}]   ;;  %s924_s1 = inlined_call_operand.hbm [shape: s32[2,1,256], index: 1, kind: input, shape index: {}]   ;;  %s925_s2 = inlined_call_operand.hbm [shape: f32[2,1,128], index: 2, kind: output, shape index: {}]  }
   0x1   :  { %9 = vsyncpa [#allocation4 + $0x1], 0 }
   0x2   :  { %10 = vsyncpa [#allocation7], 0 }
   0x3   :  { %12 = vsyncpa [#allocation7 + $0x1], 0 }
   0x4   :  { %13 = vsyncpa [#allocation5], 0 }
   0x5   :  { %15 = vsyncpa [#allocation5 + $0x1], 0  ;;  %s737_s9 = smov 0   ;;  %s739_s10 = smov 0  }
   0x6   :  { %s741_s11 = smov 0   ;;  %s743_s12 = smov 0  }
   0x7   :  { %s745_s13 = smov 0   ;;  %s747_s14 = smov 0  }
   0x8 LB: > { %s479_s15 = sadd.s32 4294967295, %s715_s14   ;;  %s480_s16 = sadd.s32 4294967294, %s715_s14   ;;  %s715_s14 = sphi %s747_s14, %s21_s14   ;;  %s711_s13 = sphi %s745_s13, %s939_s13   ;;  %s707_s12 = sphi %s743_s12, %s938_s12   ;;  %s703_s11 = sphi %s741_s11, %s937_s11   ;;  %s699_s10 = sphi %s739_s10, %s936_s10   ;;  %s695_s9 = sphi %s737_s9, %s935_s9  }
   0x9   : > { %s40_s17 = sadd.s32 1, %s711_s13  ;;  %s51_s18 = sadd.s32 1, %s703_s11 }
   0xa   : > { %p42_p0 = scmp.ge.s32.totalorder %s40_s17, 2  ;;  %p58_p1 = scmp.ne.s32.totalorder %s703_s11, %s699_s10 }
   0xb   : > { %p59_p2 = scmp.eq.s32.totalorder %s715_s14, 0  ;;  %p64_p3 = scmp.ne.s32.totalorder %s699_s10, %s695_s9 }
   0xc   : > { %s941_s17 = smov (%p42_p0, %s40_s17), 0  ;;  %p65_p5 = scmp.eq.s32.totalorder %s479_s15, 0 }
   0xd   : > { %p778_p4 = por %p59_p2, %p58_p1  ;;  %s46_s20 = ssub.s32 %s711_s13, %s941_s17 }
   0xe   : > { %p120_p6 = scmp.eq.s32.totalorder %s479_s15, 1  ;;  %p49_p7 = scmp.eq.s32.totalorder %s46_s20, 0 }
   0xf   : > { %p784_p8 = por %p65_p5, %p64_p3  ;;  %p126_p10 = scmp.eq.s32.totalorder %s480_s16, 1 }
  0x10   : > { %p788_p9 = por %p120_p6, %p58_p1  ;;  %p518_p13 = scmp.lt.s32.totalorder %s715_s14, 2 }
  0x11   : > { %s793_s23 = scalar_select %p49_p7, %s703_s11, %s51_s18  }
  0x12   : > { %p795_p11 = por %p126_p10, %p64_p3  ;;  %s802_s25 = sand.u32 1, %s703_s11  }
  0x13   : > { %s483_s26 = sshll.u32 %s802_s25, 3  ;;  %s497_s27 = sshll.u32 %s711_s13, 7 }
  0x14   : > { %s159_s30 = scalar_lea.hbm %s923_s0, %s497_s27  ;;  %s150_s3 = scalar_lea.vmem [#allocation3], %s483_s26 }
  0x15   : > { %s161_s4 = sshll.u32 %s150_s3, 4  ;;  %p811_p0 = pnand %p518_p13, %p778_p4  ;;  %s162_s4 = int_to_ptr.vmem [resolvable:$true] %s161_s4 }
  0x16   : > { %p489_p1 = scmp.ge.s32.totalorder %s715_s14, 1  ;;  %p188_p2 = scmp.lt.s32.totalorder %s715_s14, 3 }
  0x17   : > { %s147_s6 = scalar_lea.sflag [#allocation4], %s802_s25  ;;  %p577_p3 = pneg %p811_p0 }
  0x18   : > { %s588_s7 = scalar_lea.vmem %s162_s4, 128  ;;  %s717_s8 = smov [#allocation3]  }
  0x19   : > { %p589_p5 = scmp.ne.s32.totalorder %s162_s4, %s588_s7  ;;  %s593_s15 = sshll.u32 %s717_s8, 4  ;;  %s594_s15 = int_to_ptr.vmem [resolvable:$false] %s593_s15 }
  0x1a   : > { %s595_s16 = scalar_lea.vmem %s594_s15, 256  ;;  %p596_p4 = scmp.lt.s32.totalorder %s162_s4, %s594_s15 }
  0x1b   : > { %p591_p6 = pnand %p589_p5, %p577_p3  ;;  %p597_p10 = scmp.lt.s32.totalorder %s595_s16, %s588_s7 }
  0x1d   : > { %p592_p7 = pneg %p591_p6  ;;  %p598_p13 = por %p597_p10, %p596_p4 }
  0x1f   : > { %p599_p12 = pnand %p598_p13, %p592_p7 }
  0x21   : > { %602 = shalt.err (!%p599_p12)
}
  0x22   : > { %510 = dma.hbm_to_vmem [thread:$0]  (!%p811_p0), %s159_s30, 128, %s162_s4, %s147_s6  }
  0x23   : > { %p829_p5 = pnand %p489_p1, %p188_p2  ;;  %s486_s19 = sshll.u32 %s802_s25, 1 }
  0x24   : > { %s498_s20 = sshll.u32 %s711_s13, 5  ;;  %s172_s29 = scalar_lea.vmem [#allocation6], %s486_s19 }
  0x25   : > { %s181_s28 = scalar_lea.hbm %s924_s1, %s498_s20  ;;  %s183_s3 = sshll.u32 %s172_s29, 4  ;;  %s184_s3 = int_to_ptr.vmem [resolvable:$true] %s183_s3 }
  0x26   : > { %s169_s7 = scalar_lea.sflag [#allocation7], %s802_s25  ;;  %s616_s8 = scalar_lea.vmem %s184_s3, 32 }
  0x27   : > { %p617_p12 = scmp.ne.s32.totalorder %s184_s3, %s616_s8  ;;  %s718_s30 = smov [#allocation6]  }
  0x28   : > { %s621_s4 = sshll.u32 %s718_s30, 4  ;;  %s622_s4 = int_to_ptr.vmem [resolvable:$false] %s621_s4 }
  0x29   : > { %p619_p6 = pnand %p617_p12, %p577_p3  ;;  %s623_s6 = scalar_lea.vmem %s622_s4, 64 }
  0x2a   : > { %p624_p1 = scmp.lt.s32.totalorder %s184_s3, %s622_s4  ;;  %p625_p2 = scmp.lt.s32.totalorder %s623_s6, %s616_s8 }
  0x2b   : > { %p620_p7 = pneg %p619_p6 }
  0x2c   : > { %p626_p4 = por %p625_p2, %p624_p1 }
  0x2e   : > { %p627_p10 = pnand %p626_p4, %p620_p7 }
  0x30   : > { %630 = shalt.err (!%p627_p10)
}
  0x31   : > { %513 = dma.hbm_to_vmem [thread:$0]  (!%p811_p0), %s181_s28, 32, %s184_s3, %s169_s7  }
  0x32   : > { %192 = sbr.rel (%p829_p5) target bundleno = 344 (0x158), region = 28  ;;  %s847_s25 = sand.u32 (!%p829_p5), 1, %s699_s10  }
  0x33   : > { %s490_s15 = sshll.u32 (!%p829_p5), %s847_s25, 3  ;;  %s195_s16 = scalar_lea.sflag (!%p829_p5), [#allocation4], %s847_s25 }
  0x34   : > { %s198_s19 = scalar_lea.vmem (!%p829_p5), [#allocation3], %s490_s15 }
  0x37   : > { %682 = dma.done.wait (%p784_p8), %s195_s16, 128  }
  0x38   : > { %684 = vsyncadd (%p784_p8), %s195_s16, 4294967168  ;;  %s491_s5 = sshll.u32 %s847_s25, 1  ;;  %s204_s18 = scalar_lea.sflag [#allocation7], %s847_s25 }
  0x39   : > { %s207_s20 = scalar_lea.vmem [#allocation6], %s491_s5 }
  0x3a   : > { %686 = dma.done.wait (%p784_p8), %s204_s18, 32  }
  0x3b   : > { %688 = vsyncadd (%p784_p8), %s204_s18, 4294967264  ;;  %v240_v0 = vlaneseq  ;;  %v719_v3 = vmov 0.0   ;;  %v246_v6 = vld [vmem:[%s207_s20] sm:$0x3]  ;;  %v245_v9 = vld [vmem:[%s198_s19] sm:$0xff]  ;;  %vm272_vm3 = vcmask 1043456  }
  0x3c   : > { %v268_v14 = vcombine.high %v245_v9, %v245_v9  ;;  %v720_v39 = vmov 1966171168   ;;  %vm341_vm4 = vcmask 1040384   ;;  %s231_s21 = scalar_lea.vmem [#allocation8], %s847_s25  ;;  %s494_s27 = sshll.u32 %s707_s12, 4 }
  0x3d   : > { %vm861_vm0 = vcmp.lt.s32.totalorder %v240_v0, 256  ;;  %v865_v2 = vshrl.u32 %v240_v0, 7  ;;  %v306_v40 = vunpack.c.l.s4 %v720_v39  ;;  %s370_s26 = sshll.u32 %s231_s21, 4  ;;  %s368_s7 = scalar_lea.hbm %s925_s2, %s494_s27  ;;  %s878_s26 = int_to_ptr.vmem [resolvable:$true] %s370_s26 }
  0x3e   : > { %244 = vst.msk [vmem:[#allocation2] sm:$0x3] %vm861_vm0, %v719_v3  ;;  %s357_s8 = scalar_lea.sflag [#allocation5], %s847_s25  ;;  %s631_s30 = scalar_lea.vmem %s878_s26, 16 }
  0x3f   : > { %v251_v4 = vsub.s32 0, %v865_v2  ;;  %v255_v5 = vsub.s32 1, %v865_v2  ;;  %v307_v44 = vunpack.c.0.s8 %v306_v40  ;;  %p632_p8 = scmp.ne.s32.totalorder %s878_s26, %s631_s30  ;;  %s721_s4 = smov [#allocation8]  }
  0x40   : > { %s635_s12 = sshll.u32 %s721_s4, 4  ;;  %s636_s12 = int_to_ptr.vmem [resolvable:$false] %s635_s12 }
  0x41   : > { %v252_v7 = vrot.slane %v246_v6, %v251_v4  ;;  %v256_v8 = vrot.slane %v246_v6, %v255_v5  ;;  %v310_v50 = vsub.s32 %v307_v44, %v865_v2  ;;  %p633_p0 = pnand %p632_p8, %p788_p9  ;;  %s637_s6 = scalar_lea.vmem %s636_s12, 32 }
  0x42   : > { %p638_p13 = scmp.lt.s32.totalorder %s878_s26, %s636_s12  ;;  %p639_p5 = scmp.lt.s32.totalorder %s637_s6, %s631_s30 }
  0x43   : > { %vm257_vm1 = vcmp.eq.s32.totalorder %v865_v2, %v252_v7  ;;  %vm258_vm2 = vcmp.eq.s32.totalorder %v865_v2, %v256_v8  ;;  %p634_p3 = pneg %p633_p0 }
  0x44   : > { %v492_v10 = vsel %vm257_vm1, 1.0, %v719_v3  ;;  %v493_v11 = vsel %vm258_vm2, 1.0, %v719_v3  ;;  %p640_p12 = por %p639_p5, %p638_p13 }
  0x45   : > { %v263_v12 = vmul.f32 0.99998665, %v492_v10  ;;  %v264_v13 = vmul.f32 0.99998665, %v493_v11  ;;  %v301_v53 = vld [vmem:[#allocation2] sm:$0x3] }
  0x46   : > { %p641_p6 = pnand %p640_p12, %p634_p3 }
  0x47   : > { %v265_v15 = vadd.f32 3.3333333e-06, %v263_v12  ;;  %v266_v16 = vadd.f32 3.3333333e-06, %v264_v13 }
  0x49   : > { %v270_v17 = vmul.f32 %v265_v15, %v245_v9  ;;  %v271_v18 = vmul.f32 %v268_v14, %v266_v16 }
  0x4b   : > { %v273_v19 = vsel %vm272_vm3, %v270_v17, 0.0  ;;  %v280_v20 = vsel %vm272_vm3, %v271_v18, 0.0 }
  0x4c   : > { %v274_v21 = vrot.slane %v273_v19, 4  ;;  %v281_v22 = vrot.slane %v280_v20, 4 }
  0x4e   : > { %v275_v23 = vadd.f32 %v274_v21, %v273_v19  ;;  %v282_v24 = vadd.f32 %v281_v22, %v280_v20 }
  0x50   : > { %v276_v25 = vrot.slane %v275_v23, 2  ;;  %v283_v26 = vrot.slane %v282_v24, 2 }
  0x52   : > { %v277_v27 = vadd.f32 %v276_v25, %v275_v23  ;;  %v284_v28 = vadd.f32 %v283_v26, %v282_v24 }
  0x54   : > { %v278_v29 = vrot.slane %v277_v27, 1  ;;  %v285_v30 = vrot.slane %v284_v28, 1 }
  0x56   : > { %v279_v31 = vadd.f32 %v278_v29, %v277_v27  ;;  %v286_v32 = vadd.f32 %v285_v30, %v284_v28 }
  0x58   : > { %v287_v33 = vadd.f32 1e-05, %v279_v31  ;;  %v288_v34 = vadd.f32 1e-05, %v286_v32 }
  0x5a   : > { %571 = vlog2.f32 %v287_v33  ;;  %v293_v35 = vsub.f32 1.0, %v287_v33  ;;  %v294_v36 = vsub.f32 1.0, %v288_v34 }
  0x5b   : > { %573 = vlog2.f32 %v288_v34 }
  0x5c   : > { %v295_v37 = vmul.f32 %v293_v35, %v293_v35  ;;  %v296_v38 = vmul.f32 %v294_v36, %v294_v36 }
  0x5e   : > { %v297_v41 = vmul.f32 -1.0, %v295_v37  ;;  %v298_v43 = vmul.f32 -1.0, %v296_v38 }
  0x67   : > { %v572_v42 = vpop.eup %571 }
  0x68   : > { %v574_v45 = vpop.eup %573  ;;  %v290_v46 = vmul.f32 0.6931472, %v572_v42 }
  0x69   : > { %v292_v47 = vmul.f32 0.6931472, %v574_v45 }
  0x6a   : > { %v299_v48 = vmul.f32 %v297_v41, %v290_v46 }
  0x6b   : > { %v300_v49 = vmul.f32 %v298_v43, %v292_v47 }
  0x6d   : > { %v304_v51 = vcombine.low %v299_v48, %v300_v49 }
  0x6f   : > { %v311_v52 = vrot.slane %v304_v51, %v310_v50 }
  0x71   : > { %v318_v54 = vrot.slane %v311_v52, %v310_v50 }
  0x73   : > { %v320_v55 = vadd.f32 %v318_v54, %v301_v53 }
  0x75   : > { %325 = vst.msk [vmem:[#allocation2] sm:$0x3] %vm861_vm0, %v320_v55 }
  0x7c   : > { %v329_v56 = vld [vmem:[#allocation2] sm:$0x3] }
  0x7d   : > { %v334_v57 = vrot.slane %v329_v56, %v251_v4  ;;  %v338_v58 = vrot.slane %v329_v56, %v255_v5 }
  0x7f   : > { %v342_v59 = vsel %vm341_vm4, %v334_v57, 0.0  ;;  %v343_v60 = vsel %vm341_vm4, %v338_v58, 0.0 }
  0x80   : > { %v344_v61 = vadd.f32 %v343_v60, %v342_v59 }
  0x82   : > { %345 = vadd.xlane.f32.xlu0 %v344_v61 }
 0x10b   : > { %v346_v62 = vpop.xlane.xlu0 %345 }
 0x10c   : > { %v347_v63 = vrot.slane %v346_v62, 4 }
 0x10e   : > { %v348_v0 = vadd.f32 %v347_v63, %v346_v62 }
 0x110   : > { %v349_v2 = vrot.slane %v348_v0, 2 }
 0x112   : > { %v350_v3 = vadd.f32 %v349_v2, %v348_v0 }
 0x114   : > { %v351_v6 = vrot.slane %v350_v3, 1 }
 0x116   : > { %v352_v1 = vadd.f32 %v351_v6, %v350_v3 }
 0x118   : > { %499 = vpush %v352_v1 }
 0x149   : > { %s500_s28 = spop %499 }
 0x14a   : > { %v354_v4 = vstv %s500_s28 }
 0x14b   : > { %355 = vst [vmem:[%s231_s21] sm:$0x1] %v354_v4 }
 0x14c   : > { %644 = shalt.err (!%p641_p6)
}
 0x14d   : > { %s645_s15 = scalar_lea.hbm %s368_s7, 16  ;;  %s649_s19 = scalar_lea.hbm %s925_s2, 32 }
 0x14e   : > { %p646_p7 = scmp.ne.s32.totalorder %s368_s7, %s645_s15  ;;  %p650_p4 = scmp.lt.s32.totalorder %s368_s7, %s925_s2 }
 0x14f   : > { %p651_p10 = scmp.lt.s32.totalorder %s649_s19, %s645_s15 }
 0x150   : > { %p647_p1 = pnand %p646_p7, %p788_p9 }
 0x151   : > { %p652_p8 = por %p651_p10, %p650_p4 }
 0x152   : > { %p648_p2 = pneg %p647_p1 }
 0x154   : > { %p653_p0 = pnand %p652_p8, %p648_p2 }
 0x156   : > { %656 = shalt.err (!%p653_p0)
}
 0x157   : > { %505 = dma.vmem_to_hbm [thread:$0]  (%p788_p9), %s878_s26, 16, %s368_s7, %s357_s8  }
 0x158 PF: > { %s382_s20 = sand.u32 1, %s695_s9   ;;  %p934_p3 = scmp.ge.s32.totalorder %s715_s14, 2 }
 0x159   : > { %s383_s21 = scalar_lea.sflag [#allocation5], %s382_s20 }
 0x15a   : > { %p515_p13 = pnand %p934_p3, %p795_p11 }
 0x15c   : > { %p516_p5 = pneg %p515_p13 }
 0x15e   : > { %690 = dma.done.wait (%p516_p5), %s383_s21, 16  }
 0x15f   : > { %692 = vsyncadd (%p516_p5), %s383_s21, 4294967280  ;;  %s21_s14 = sadd.s32 1, %s715_s14   ;;  %s935_s9 = smov %s699_s10 }
 0x160   : > { %p18_p12 = scmp.ge.s32.totalorder %s21_s14, 4   ;;  %s936_s10 = smov %s703_s11 }
 0x161   : > { %s937_s11 = smov %s793_s23  ;;  %s938_s12 = smov %s711_s13 }
 0x162   : > { %s939_s13 = smov %s941_s17  ;;  %20 = sbr.rel (!%p18_p12) target bundleno = 8 (0x8), region = 94 }
 0x167   :  { %387 = vsyncpa [#allocation4], 1 }
 0x168   :  { %389 = vsyncpa [#allocation4 + $0x1], 1 }
 0x169   :  { %390 = vsyncpa [#allocation7], 1 }
 0x16a   :  { %392 = vsyncpa [#allocation7 + $0x1], 1 }
 0x16b   :  { %393 = vsyncpa [#allocation5], 1 }
 0x16c   :  { %395 = vsyncpa [#allocation5 + $0x1], 1 }

</bundles_post_ra>
